<compile_context>
chip_gen: v7x
topology: tpu7x:2x2x1
jax: 0.10.0
libtpu: 0.0.40
codegen_flags: <defaults>
</compile_context>

<pallas_src>
import jax
import jax.numpy as jnp
from jax.experimental import pallas as pl
from jax.experimental.pallas import tpu as pltpu


def _choose_tile_m(bs: int, bytes_per_elem: int) -> int:
    """Pick the row-tile height: biggest tile whose double-buffered input blocks
    stay ~<=16 MiB (safe for v7x's 64 MiB VMEM, lets v5e/v6e pipeline deeply)."""
    if bs <= 512:
        return bs                       # single row tile; (bs, bs) == full dims
    budget = 16 << 20
    rows = budget // (2 * bs * bytes_per_elem)   # x2 for double buffering
    rows = (rows // 8) * 8
    return int(max(8, min(512, rows)))


def _make_ave_kernel(bs, tile_m, acc_rows, tiles_total, tiles_per_split):
    bs_f = float(bs)

    def kernel(d_ref, m_ref, num_ref, den_ref):
        i = pl.program_id(0)            # parallel split (v7x: one per TensorCore)
        j = pl.program_id(1)            # row-tile reduction axis ("arbitrary")

        @pl.when(j == 0)
        def _init():
            num_ref[...] = jnp.zeros_like(num_ref)
            den_ref[...] = jnp.zeros_like(den_ref)

        tile_linear = i * tiles_per_split + j
        tile_clamped = jnp.minimum(tile_linear, tiles_total - 1)
        tile_valid = tile_linear < tiles_total        # scalar; odd tile counts
        row_base = tile_clamped * tile_m

        d = d_ref[...].astype(jnp.float32)            # s0 - s1 (class-logit diff)
        m = m_ref[...].astype(jnp.float32)            # neg_mask

        local_row = jax.lax.broadcasted_iota(jnp.int32, (tile_m, bs), 0)
        col = jax.lax.broadcasted_iota(jnp.int32, (tile_m, bs), 1)
        grow = row_base + local_row
        is_diag = grow == col
        valid = jnp.logical_and(grow < bs, tile_valid)   # mask padded/dup rows

        # Soft-label CE over 2 classes == softplus of the signed logit difference:
        #   diagonal  (label [1,0]): -log_softmax[0] = softplus(s1 - s0) = softplus(-d)
        #   off-diag  (label [0,1]): -log_softmax[1] = softplus(s0 - s1) = softplus(+d)
        t = jnp.where(is_diag, -d, d)
        ce = jnp.maximum(t, 0.0) + jnp.log(1.0 + jnp.exp(-jnp.abs(t)))

        wm = jnp.where(is_diag, m * bs_f, m)          # (1 + (bs-1)*eye) * mask
        num_tile = jnp.where(valid, ce * wm, 0.0)
        den_tile = jnp.where(valid, m, 0.0)

        # Fold sublane groups with pure VPU adds; the full cross-lane collapse
        # happens once, outside the kernel (deferred reduction).
        nsum = num_tile[0:acc_rows, :]
        dsum = den_tile[0:acc_rows, :]
        for k in range(1, tile_m // acc_rows):
            nsum = nsum + num_tile[k * acc_rows:(k + 1) * acc_rows, :]
            dsum = dsum + den_tile[k * acc_rows:(k + 1) * acc_rows, :]
        num_ref[...] += nsum
        den_ref[...] += dsum

    return kernel


def loss_ave(scores_raw, neg_mask, eps=1e-8, *, tile_m=None):
    """JAX/Pallas equivalent of loss_AVE.forward(..., return_err=False)."""
    bs = scores_raw.shape[0]
    assert scores_raw.shape == (bs, bs, 2)
    assert neg_mask.shape == (bs, bs)

    # The 2-class soft-label CE only depends on the class-logit difference, so
    # the kernel reads one (bs, bs) plane instead of two materialized class
    # planes.  Dtypes are preserved here; casts to f32 happen inside the kernel.
    diff = scores_raw[..., 0] - scores_raw[..., 1]
    mask = neg_mask

    bytes_per_elem = diff.dtype.itemsize + mask.dtype.itemsize
    if tile_m is None:
        tile_m = _choose_tile_m(bs, bytes_per_elem)
    acc_rows = 8 if tile_m % 8 == 0 else tile_m
    tiles_total = pl.cdiv(bs, tile_m)
    split = 2 if tiles_total >= 2 else 1           # exploit 2 TensorCores on v7x
    tiles_per_split = pl.cdiv(tiles_total, split)

    def data_map(i, j):
        return (jnp.minimum(i * tiles_per_split + j, tiles_total - 1), 0)

    vmem_bytes = 2 * tile_m * bs * bytes_per_elem          # double-buffered inputs
    vmem_bytes += 2 * 2 * acc_rows * bs * 4                # resident output accumulators
    vmem_bytes += 2 << 20                                  # slack
    vmem_limit = int(min(max(vmem_bytes, 32 << 20), 64 << 20))

    kernel = _make_ave_kernel(bs, tile_m, acc_rows, tiles_total, tiles_per_split)

    num_parts, den_parts = pl.pallas_call(
        kernel,
        out_shape=(
            jax.ShapeDtypeStruct((split, acc_rows, bs), jnp.float32),
            jax.ShapeDtypeStruct((split, acc_rows, bs), jnp.float32),
        ),
        grid=(split, tiles_per_split),
        in_specs=[
            pl.BlockSpec((tile_m, bs), data_map),
            pl.BlockSpec((tile_m, bs), data_map),
        ],
        out_specs=(
            pl.BlockSpec((None, acc_rows, bs), lambda i, j: (i, 0, 0)),
            pl.BlockSpec((None, acc_rows, bs), lambda i, j: (i, 0, 0)),
        ),
        compiler_params=pltpu.CompilerParams(
            dimension_semantics=("parallel", "arbitrary"),
            vmem_limit_bytes=vmem_limit,
        ),
    )(diff, mask)

    total = jnp.sum(num_parts) / (jnp.sum(den_parts) + eps)

    loss = {"total": total, "easy": None, "hard": None}
    loss_perfect = {"total": 0.0, "random": -jnp.log10(jnp.array([0.5]))}
    # TODO(synk): return_err=True branch (argmax error counting) not implemented.
    return loss, loss_perfect


def _loss_ave_ref(scores_raw, neg_mask, eps=1e-8):
    """Pure-JAX reference for correctness checking."""
    bs = scores_raw.shape[0]
    eye = jnp.eye(bs, dtype=jnp.float32)
    labels = jnp.stack([eye, 1.0 - eye], axis=-1)                  # (bs, bs, 2)
    logp = jax.nn.log_softmax(scores_raw.astype(jnp.float32), axis=-1)
    ce = -jnp.sum(labels * logp, axis=-1)                           # (bs, bs)
    ce = ce * neg_mask.astype(jnp.float32)
    ce = (jnp.ones((bs, bs)) + (bs - 1) * eye) * ce
    return jnp.sum(ce) / (jnp.sum(neg_mask.astype(jnp.float32)) + eps)


if __name__ == "__main__":
    key = jax.random.PRNGKey(0)
    k1, k2, k3, k4 = jax.random.split(key, 4)

    # Case 1: tiny bs (single-tile path, same as the module's typical use).
    bs = 8
    scores_raw = jax.random.normal(k1, (bs, bs, 2), dtype=jnp.float32)
    neg_mask = (jax.random.uniform(k2, (bs, bs)) > 0.3).astype(jnp.float32)
    loss, loss_perfect = loss_ave(scores_raw, neg_mask)
    total = jax.block_until_ready(loss["total"])
    ref = _loss_ave_ref(scores_raw, neg_mask)
    assert jnp.allclose(total, ref, rtol=1e-5, atol=1e-5), (total, ref)

    # Case 2: small shape that still exercises the tiled / 2-way-split /
    # remainder-row-masking paths (bs=40, tile_m=16 -> 3 tiles across 2 splits).
    bs2 = 40
    scores2 = jax.random.normal(k3, (bs2, bs2, 2), dtype=jnp.float32)
    mask2 = (jax.random.uniform(k4, (bs2, bs2)) > 0.3).astype(jnp.float32)
    loss2, _ = loss_ave(scores2, mask2, tile_m=16)
    total2 = jax.block_until_ready(loss2["total"])
    ref2 = _loss_ave_ref(scores2, mask2)
    assert jnp.allclose(total2, ref2, rtol=1e-5, atol=1e-5), (total2, ref2)

    print("KERNEL_OK")
</pallas_src>

<mosaic_0001>
module attributes {stable_mosaic.version = 11 : i64} {
  func.func @kernel(%arg0: i32, %arg1: i32, %arg2: memref<8x8xf32, #tpu.memory_space<vmem>>, %arg3: memref<8x8xf32, #tpu.memory_space<vmem>>, %arg4: memref<1x8x8xf32, #tpu.memory_space<vmem>>, %arg5: memref<1x8x8xf32, #tpu.memory_space<vmem>>) attributes {dimension_semantics = [#tpu.dimension_semantics<parallel>, #tpu.dimension_semantics<arbitrary>], iteration_bounds = array<i64: 1, 1>, scalar_prefetch = 0 : i64, scratch_operands = 0 : i64, tpu.core_type = #tpu.core_type<tc>, window_params = [{transform_indices = @transform_0, window_bounds = array<i64: 8, 8>}, {transform_indices = @transform_1, window_bounds = array<i64: 8, 8>}, {transform_indices = @transform_2, window_bounds = array<i64: 1, 8, 8>}, {transform_indices = @transform_3, window_bounds = array<i64: 1, 8, 8>}]} {
    %c0_i32 = arith.constant 0 : i32
    %0 = arith.cmpi eq, %arg1, %c0_i32 : i32
    %1 = arith.extui %0 : i1 to i32
    %c0_i32_0 = arith.constant 0 : i32
    %2 = arith.cmpi ne, %1, %c0_i32_0 : i32
    scf.if %2 {
      %cst_25 = arith.constant 0.000000e+00 : f32
      %52 = vector.broadcast %cst_25 : f32 to vector<8x8xf32>
      %c0_26 = arith.constant 0 : index
      %c0_27 = arith.constant 0 : index
      %c0_28 = arith.constant 0 : index
      %53 = vector.load %arg4[%c0_26, %c0_27, %c0_28] : memref<1x8x8xf32, #tpu.memory_space<vmem>>, vector<1x8x8xf32>
      %54 = vector.shape_cast %53 : vector<1x8x8xf32> to vector<8x8xf32>
      %55 = vector.shape_cast %52 : vector<8x8xf32> to vector<1x8x8xf32>
      tpu.vector_store %arg4[%c0_26, %c0_27, %c0_28], %55 {strides = array<i32>} : memref<1x8x8xf32, #tpu.memory_space<vmem>>, vector<1x8x8xf32>,
      %cst_29 = arith.constant 0.000000e+00 : f32
      %56 = vector.broadcast %cst_29 : f32 to vector<8x8xf32>
      %c0_30 = arith.constant 0 : index
      %c0_31 = arith.constant 0 : index
      %c0_32 = arith.constant 0 : index
      %57 = vector.load %arg5[%c0_30, %c0_31, %c0_32] : memref<1x8x8xf32, #tpu.memory_space<vmem>>, vector<1x8x8xf32>
      %58 = vector.shape_cast %57 : vector<1x8x8xf32> to vector<8x8xf32>
      %59 = vector.shape_cast %56 : vector<8x8xf32> to vector<1x8x8xf32>
      tpu.vector_store %arg5[%c0_30, %c0_31, %c0_32], %59 {strides = array<i32>} : memref<1x8x8xf32, #tpu.memory_space<vmem>>, vector<1x8x8xf32>,
    } else {
    }
    %c1_i32 = arith.constant 1 : i32
    %3 = arith.muli %arg0, %c1_i32 : i32
    %4 = arith.addi %3, %arg1 : i32
    %c0_i32_1 = arith.constant 0 : i32
    %5 = arith.minsi %4, %c0_i32_1 : i32
    %c1_i32_2 = arith.constant 1 : i32
    %6 = arith.cmpi slt, %4, %c1_i32_2 : i32
    %c8_i32 = arith.constant 8 : i32
    %7 = arith.muli %5, %c8_i32 : i32
    %c0 = arith.constant 0 : index
    %c0_3 = arith.constant 0 : index
    %8 = vector.load %arg2[%c0, %c0_3] : memref<8x8xf32, #tpu.memory_space<vmem>>, vector<8x8xf32>
    %c0_4 = arith.constant 0 : index
    %c0_5 = arith.constant 0 : index
    %9 = vector.load %arg3[%c0_4, %c0_5] : memref<8x8xf32, #tpu.memory_space<vmem>>, vector<8x8xf32>
    %10 = tpu.iota {dimensions = array<i32: 0>} : vector<8x8xi32>
    %11 = tpu.iota {dimensions = array<i32: 1>} : vector<8x8xi32>
    %12 = vector.broadcast %7 : i32 to vector<8x8xi32>
    %13 = arith.addi %12, %10 : vector<8x8xi32>
    %14 = arith.cmpi eq, %13, %11 : vector<8x8xi32>
    %c8_i32_6 = arith.constant 8 : i32
    %15 = vector.broadcast %c8_i32_6 : i32 to vector<8x8xi32>
    %16 = arith.cmpi slt, %13, %15 : vector<8x8xi32>
    %17 = vector.broadcast %6 : i1 to vector<8x8xi1>
    %18 = arith.andi %16, %17 : vector<8x8xi1>
    %cst = arith.constant 0.000000e+00 : f32
    %19 = vector.broadcast %cst : f32 to vector<8x8xf32>
    %20 = arith.subf %19, %8 : vector<8x8xf32>
    %21 = arith.select %14, %20, %8 : vector<8x8xi1>, vector<8x8xf32>
    %cst_7 = arith.constant 0.000000e+00 : f32
    %22 = vector.broadcast %cst_7 : f32 to vector<8x8xf32>
    %23 = arith.maximumf %21, %22 : vector<8x8xf32>
    %24 = math.absf %21 : vector<8x8xf32>
    %cst_8 = arith.constant 0.000000e+00 : f32
    %25 = vector.broadcast %cst_8 : f32 to vector<8x8xf32>
    %26 = arith.subf %25, %24 : vector<8x8xf32>
    %27 = math.exp %26 : vector<8x8xf32>
    %cst_9 = arith.constant 1.000000e+00 : f32
    %28 = vector.broadcast %cst_9 : f32 to vector<8x8xf32>
    %29 = arith.addf %28, %27 : vector<8x8xf32>
    %30 = math.log %29 : vector<8x8xf32>
    %31 = arith.addf %23, %30 : vector<8x8xf32>
    %cst_10 = arith.constant 8.000000e+00 : f32
    %32 = vector.broadcast %cst_10 : f32 to vector<8x8xf32>
    %33 = arith.mulf %9, %32 : vector<8x8xf32>
    %34 = arith.select %14, %33, %9 : vector<8x8xi1>, vector<8x8xf32>
    %35 = arith.mulf %31, %34 : vector<8x8xf32>
    %cst_11 = arith.constant 0.000000e+00 : f32
    %36 = vector.broadcast %cst_11 : f32 to vector<8x8xf32>
    %37 = arith.select %18, %35, %36 : vector<8x8xi1>, vector<8x8xf32>
    %cst_12 = arith.constant 0.000000e+00 : f32
    %38 = vector.broadcast %cst_12 : f32 to vector<8x8xf32>
    %39 = arith.select %18, %9, %38 : vector<8x8xi1>, vector<8x8xf32>
    %c0_13 = arith.constant 0 : index
    %c0_14 = arith.constant 0 : index
    %c0_15 = arith.constant 0 : index
    %40 = vector.load %arg4[%c0_13, %c0_14, %c0_15] : memref<1x8x8xf32, #tpu.memory_space<vmem>>, vector<1x8x8xf32>
    %41 = vector.shape_cast %40 : vector<1x8x8xf32> to vector<8x8xf32>
    %42 = arith.addf %41, %37 : vector<8x8xf32>
    %c0_16 = arith.constant 0 : index
    %c0_17 = arith.constant 0 : index
    %c0_18 = arith.constant 0 : index
    %43 = vector.load %arg4[%c0_16, %c0_17, %c0_18] : memref<1x8x8xf32, #tpu.memory_space<vmem>>, vector<1x8x8xf32>
    %44 = vector.shape_cast %43 : vector<1x8x8xf32> to vector<8x8xf32>
    %45 = vector.shape_cast %42 : vector<8x8xf32> to vector<1x8x8xf32>
    tpu.vector_store %arg4[%c0_16, %c0_17, %c0_18], %45 {strides = array<i32>} : memref<1x8x8xf32, #tpu.memory_space<vmem>>, vector<1x8x8xf32>,
    %c0_19 = arith.constant 0 : index
    %c0_20 = arith.constant 0 : index
    %c0_21 = arith.constant 0 : index
    %46 = vector.load %arg5[%c0_19, %c0_20, %c0_21] : memref<1x8x8xf32, #tpu.memory_space<vmem>>, vector<1x8x8xf32>
    %47 = vector.shape_cast %46 : vector<1x8x8xf32> to vector<8x8xf32>
    %48 = arith.addf %47, %39 : vector<8x8xf32>
    %c0_22 = arith.constant 0 : index
    %c0_23 = arith.constant 0 : index
    %c0_24 = arith.constant 0 : index
    %49 = vector.load %arg5[%c0_22, %c0_23, %c0_24] : memref<1x8x8xf32, #tpu.memory_space<vmem>>, vector<1x8x8xf32>
    %50 = vector.shape_cast %49 : vector<1x8x8xf32> to vector<8x8xf32>
    %51 = vector.shape_cast %48 : vector<8x8xf32> to vector<1x8x8xf32>
    tpu.vector_store %arg5[%c0_22, %c0_23, %c0_24], %51 {strides = array<i32>} : memref<1x8x8xf32, #tpu.memory_space<vmem>>, vector<1x8x8xf32>,
    return
  }
  func.func @transform_0(%arg0: i32, %arg1: i32) -> (i32, i32) {
    %c1_i32 = arith.constant 1 : i32
    %0 = arith.muli %arg0, %c1_i32 : i32
    %1 = arith.addi %0, %arg1 : i32
    %c0_i32 = arith.constant 0 : i32
    %2 = arith.minsi %1, %c0_i32 : i32
    %c0_i32_0 = arith.constant 0 : i32
    %c0_i32_1 = arith.constant 0 : i32
    return %2, %c0_i32_0 : i32, i32
  }
  func.func @transform_1(%arg0: i32, %arg1: i32) -> (i32, i32) {
    %c1_i32 = arith.constant 1 : i32
    %0 = arith.muli %arg0, %c1_i32 : i32
    %1 = arith.addi %0, %arg1 : i32
    %c0_i32 = arith.constant 0 : i32
    %2 = arith.minsi %1, %c0_i32 : i32
    %c0_i32_0 = arith.constant 0 : i32
    %c0_i32_1 = arith.constant 0 : i32
    return %2, %c0_i32_0 : i32, i32
  }
  func.func @transform_2(%arg0: i32, %arg1: i32) -> (i32, i32, i32) {
    %c0_i32 = arith.constant 0 : i32
    %c0_i32_0 = arith.constant 0 : i32
    %c0_i32_1 = arith.constant 0 : i32
    return %arg0, %c0_i32, %c0_i32_0 : i32, i32, i32
  }
  func.func @transform_3(%arg0: i32, %arg1: i32) -> (i32, i32, i32) {
    %c0_i32 = arith.constant 0 : i32
    %c0_i32_0 = arith.constant 0 : i32
    %c0_i32_1 = arith.constant 0 : i32
    return %arg0, %c0_i32, %c0_i32_0 : i32, i32, i32
  }
}

</mosaic_0001>

<bundles_post_ra>
// kernel: tpu_custom_call.1
= control target key start
LH: loop header
LB: loop body
LE: loop exit
PB: predicated region body
PF: predicated region fallthrough
CT: control target
= control target key end

     0   :  { %9 = vsyncpa [#allocation3], 0  ;;  %s322_s0 = inlined_call_operand.hbm [shape: f32[8,8], index: 0, kind: input, shape index: {}]   ;;  %s323_s1 = inlined_call_operand.hbm [shape: f32[8,8], index: 1, kind: input, shape index: {}]   ;;  %s324_s2 = inlined_call_operand.hbm [shape: f32[1,8,8], index: 2, kind: output, shape index: {0}]   ;;  %s325_s3 = inlined_call_operand.hbm [shape: f32[1,8,8], index: 3, kind: output, shape index: {1}]  }
   0x1   :  { %10 = vsyncpa [#allocation6], 0 }
   0x2   :  { %11 = vsyncpa [#allocation4], 0 }
   0x3   :  { %12 = vsyncpa [#allocation9], 0  ;;  %s243_s12 = smov [#allocation2]   ;;  %s244_s14 = smov [#allocation5]  }
   0x4   :  { %s24_s13 = sshll.u32 %s243_s12, 4  ;;  %s39_s15 = sshll.u32 %s244_s14, 4  ;;  %s25_s13 = int_to_ptr.vmem [resolvable:$true] %s24_s13  ;;  %s40_s15 = int_to_ptr.vmem [resolvable:$true] %s39_s15 }
   0x5   :  { %s147_s18 = scalar_lea.hbm %s322_s0, 128 }
   0x6   :  { %p148_p0 = scmp.ne.s32.totalorder %s322_s0, %s147_s18  ;;  %p151_p1 = scmp.lt.u32.totalorder %s147_s18, %s322_s0 }
   0x8   :  { %p153_p2 = pnand %p151_p1, %p148_p0 }
   0xa   :  { %156 = shalt.err (!%p153_p2)
}
   0xb   :  { %s157_s23 = scalar_lea.vmem %s25_s13, 128  ;;  %p162_p4 = scmp.lt.s32.totalorder %s25_s13, %s25_s13 }
   0xc   :  { %p158_p3 = scmp.ne.s32.totalorder %s25_s13, %s157_s23  ;;  %p163_p5 = scmp.lt.s32.totalorder %s157_s23, %s157_s23 }
   0xe   :  { %p164_p6 = por %p163_p5, %p162_p4 }
  0x10   :  { %p165_p7 = pnand %p164_p6, %p158_p3 }
  0x12   :  { %168 = shalt.err (!%p165_p7)
}
  0x13   :  { %27 = dma.hbm_to_vmem [thread:$0]  %s322_s0, 128, %s25_s13, [#allocation3]  }
  0x14   :  { %s169_s28 = scalar_lea.hbm %s323_s1, 128 }
  0x15   :  { %p170_p8 = scmp.ne.s32.totalorder %s323_s1, %s169_s28  ;;  %p173_p9 = scmp.lt.u32.totalorder %s169_s28, %s323_s1 }
  0x17   :  { %p175_p10 = pnand %p173_p9, %p170_p8 }
  0x19   :  { %178 = shalt.err (!%p175_p10)
}
  0x1a   :  { %s179_s6 = scalar_lea.vmem %s40_s15, 128  ;;  %p184_p12 = scmp.lt.s32.totalorder %s40_s15, %s40_s15 }
  0x1b   :  { %p180_p11 = scmp.ne.s32.totalorder %s40_s15, %s179_s6  ;;  %p185_p13 = scmp.lt.s32.totalorder %s179_s6, %s179_s6 }
  0x1d   :  { %p186_p0 = por %p185_p13, %p184_p12 }
  0x1f   :  { %p187_p1 = pnand %p186_p0, %p180_p11 }
  0x21   :  { %190 = shalt.err (!%p187_p1)
}
  0x22   :  { %42 = dma.hbm_to_vmem [thread:$0]  %s323_s1, 128, %s40_s15, [#allocation6]  }
  0x23   :  { %235 = dma.done.wait [#allocation3], 128  }
  0x24   :  { %236 = vsyncadd [#allocation3], 4294967168 }
  0x25   :  { %237 = dma.done.wait [#allocation6], 128  }
  0x26   :  { %238 = vsyncadd [#allocation6], 4294967168  ;;  %vm59_vm0 = vcmask 64512   ;;  %v69_v0 = vlaneseq  ;;  %v245_v1 = vmov 0.0   ;;  %s246_s8 = smov [#allocation8]   ;;  %v67_v4 = vld [vmem:[#allocation2] sm:$0xff] }
  0x27   :  { %60 = vst.msk [vmem:[#allocation7] sm:$0xff] %vm59_vm0, %v245_v1  ;;  %61 = vst.msk [vmem:[#allocation8] sm:$0xff] %vm59_vm0, %v245_v1  ;;  %s120_s9 = sshll.u32 %s246_s8, 4  ;;  %v68_v5 = vld [vmem:[#allocation5] sm:$0xff]  ;;  %v81_v6 = vsub.f32 0.0, %v67_v4  ;;  %s121_s9 = int_to_ptr.vmem [resolvable:$true] %s120_s9 }
  0x28   :  { %v70_v2 = vshrl.u32 %v69_v0, 7  ;;  %v72_v3 = vand.u32 127, %v69_v0  ;;  %s191_s1 = scalar_lea.vmem %s121_s9, 128  ;;  %p196_p3 = scmp.lt.s32.totalorder %s121_s9, %s121_s9 }
  0x29   :  { %p192_p2 = scmp.ne.s32.totalorder %s121_s9, %s191_s1  ;;  %p197_p4 = scmp.lt.s32.totalorder %s191_s1, %s191_s1 }
  0x2a   :  { %vm75_vm1 = vcmp.eq.s32.totalorder %v70_v2, %v72_v3 }
  0x2b   :  { %v82_v9 = vsel %vm75_vm1, %v81_v6, %v67_v4  ;;  %p198_p5 = por %p197_p4, %p196_p3 }
  0x2c   :  { %v84_v10 = vand.u32 2147483647, %v82_v9 }
  0x2d   :  { %p199_p6 = pnand %p198_p5, %p192_p2 }
  0x2e   :  { %v101_v7 = vld [vmem:[#allocation8] sm:$0xff] }
  0x2f   :  { %v102_v8 = vadd.f32 %v101_v7, %v68_v5 }
  0x31   :  { %103 = vst.msk [vmem:[#allocation8] sm:$0xff] %vm59_vm0, %v102_v8 }
  0x32   :  { %202 = shalt.err (!%p199_p6)
}
  0x33   :  { %s203_s12 = scalar_lea.hbm %s325_s3, 128 }
  0x34   :  { %p204_p7 = scmp.ne.s32.totalorder %s325_s3, %s203_s12  ;;  %p207_p8 = scmp.lt.u32.totalorder %s203_s12, %s325_s3 }
  0x36   :  { %p209_p9 = pnand %p207_p8, %p204_p7 }
  0x38   :  { %212 = shalt.err (!%p209_p9)
}
  0x39   :  { %123 = dma.vmem_to_hbm [thread:$0]  %s121_s9, 128, %s325_s3, [#allocation9]   ;;  %v85_v11 = vsub.f32 0.0, %v84_v10  ;;  %v92_v15 = vmul.f32 8.0, %v68_v5  ;;  %v83_v16 = vmax.f32 %v82_v9, 0.0  ;;  %v97_v21 = vld [vmem:[#allocation7] sm:$0xff] }
  0x3a   :  { %s247_s19 = smov [#allocation7]  }
  0x3b   :  { %v86_v12 = vmul.f32 1.442695, %v85_v11  ;;  %v93_v19 = vsel %vm75_vm1, %v92_v15, %v68_v5  ;;  %s110_s20 = sshll.u32 %s247_s19, 4  ;;  %s111_s20 = int_to_ptr.vmem [resolvable:$true] %s110_s20 }
  0x3c   :  { %s213_s3 = scalar_lea.vmem %s111_s20, 128  ;;  %p218_p11 = scmp.lt.s32.totalorder %s111_s20, %s111_s20 }
  0x3d   :  { %143 = vpow2.f32 %v86_v12  ;;  %p214_p10 = scmp.ne.s32.totalorder %s111_s20, %s213_s3  ;;  %p219_p12 = scmp.lt.s32.totalorder %s213_s3, %s213_s3 }
  0x3f   :  { %p220_p13 = por %p219_p12, %p218_p11 }
  0x41   :  { %p221_p0 = pnand %p220_p13, %p214_p10 }
  0x47   :  { %v144_v13 = vpop.eup %143 }
  0x48   :  { %v88_v14 = vadd.f32 1.0, %v144_v13 }
  0x4a   :  { %145 = vlog2.f32 %v88_v14 }
  0x54   :  { %v146_v17 = vpop.eup %145 }
  0x55   :  { %v90_v18 = vmul.f32 0.6931472, %v146_v17 }
  0x57   :  { %v91_v20 = vadd.f32 %v90_v18, %v83_v16 }
  0x59   :  { %v94_v22 = vmul.f32 %v93_v19, %v91_v20 }
  0x5b   :  { %v98_v23 = vadd.f32 %v97_v21, %v94_v22 }
  0x5d   :  { %100 = vst.msk [vmem:[#allocation7] sm:$0xff] %vm59_vm0, %v98_v23 }
  0x5e   :  { %224 = shalt.err (!%p221_p0)
}
  0x5f   :  { %s225_s23 = scalar_lea.hbm %s324_s2, 128 }
  0x60   :  { %p226_p1 = scmp.ne.s32.totalorder %s324_s2, %s225_s23  ;;  %p229_p2 = scmp.lt.u32.totalorder %s225_s23, %s324_s2 }
  0x62   :  { %p231_p3 = pnand %p229_p2, %p226_p1 }
  0x64   :  { %234 = shalt.err (!%p231_p3)
}
  0x65   :  { %113 = dma.vmem_to_hbm [thread:$0]  %s111_s20, 128, %s324_s2, [#allocation4]  }
  0x66   :  { %239 = dma.done.wait [#allocation4], 128  }
  0x67   :  { %240 = vsyncadd [#allocation4], 4294967168 }
  0x68   :  { %241 = dma.done.wait [#allocation9], 128  }
  0x69   :  { %242 = vsyncadd [#allocation9], 4294967168 }
  0x6a   :  { %130 = vsyncpa [#allocation3], 1 }
  0x6b   :  { %131 = vsyncpa [#allocation6], 1 }
  0x6c   :  { %132 = vsyncpa [#allocation4], 1 }
  0x6d   :  { %133 = vsyncpa [#allocation9], 1 }

</bundles_post_ra>
